<compile_context>
chip_gen: v5e
topology: v5e:2x2
jax: 0.10.0
libtpu: 0.0.40
codegen_flags: <defaults>
</compile_context>

<pallas_src>
import functools

import jax
import jax.numpy as jnp
from jax.experimental import pallas as pl
from jax.experimental.pallas import tpu as pltpu

_HIGHEST = jax.lax.Precision.HIGHEST


def _vmem_capacity_bytes():
    try:
        cap = int(pltpu.get_tpu_info().vmem_capacity_bytes)
    except Exception:
        cap = 128 * 1024 * 1024
    return max(cap, 64 * 1024 * 1024)


def _round_up(n, m):
    return ((n + m - 1) // m) * m


def _pick_batch_tile(B, max_bt):
    """Largest divisor of B <= max_bt, preferring >=4 (and even) grid steps."""
    best_d, best_rank = 1, None
    for d in range(1, B + 1):
        if B % d != 0 or d > max_bt:
            continue
        steps = B // d
        rank = (steps >= 4 and steps % 2 == 0, steps >= 4, steps >= 2)
        if best_rank is None or (rank, d) > (best_rank, best_d):
            best_d, best_rank = d, rank
    return best_d


# ----------------------------- fused path -----------------------------------


def _fused_kernel(x_ref, w1_ref, b1_ref, w2_ref, b2_ref, o_ref):
    # Global average pool as a lane-sum; the 1/(H*W) factor is folded into w1.
    y = jnp.sum(x_ref[...].astype(jnp.float32), axis=-1)            # (Bt, C)
    # 1x1 conv C -> C//8 (+bias), ReLU
    h = jnp.dot(y, w1_ref[...], preferred_element_type=jnp.float32,
                precision=_HIGHEST) + b1_ref[...]
    h = jnp.maximum(h, 0.0)                                          # (Bt, Cr)
    # 1x1 conv C//8 -> C (+bias), sigmoid
    s = jnp.dot(h, w2_ref[...], preferred_element_type=jnp.float32,
                precision=_HIGHEST) + b2_ref[...]
    s = jax.nn.sigmoid(s)                                            # (Bt, C)
    # Re-read x_ref so the slab is not held live across the squeeze/excite.
    o_ref[...] = (x_ref[...] * s[:, :, None]).astype(o_ref.dtype)


def _calayer_fused(x_flat, w1_mat, b1_2d, w2_mat, b2_2d, *, block_budget,
                   vmem_cap):
    B, C, HW = x_flat.shape
    Cr = w1_mat.shape[1]
    itemsize = x_flat.dtype.itemsize
    bytes_per_image = C * HW * itemsize

    max_bt = max(1, block_budget // bytes_per_image)
    Bt = _pick_batch_tile(B, max_bt)
    block_bytes = Bt * bytes_per_image

    weight_bytes = 4 * (2 * C * Cr + C + Cr)
    needed = 4 * block_bytes + 2 * weight_bytes + (4 << 20)   # dbl-buf in+out
    vmem_limit = int(min(max(needed, 32 << 20), (vmem_cap * 3) // 4))

    cost = pl.CostEstimate(
        flops=int(2 * B * C * HW + 4 * B * C * Cr),
        transcendentals=int(B * C),
        bytes_accessed=int(2 * B * C * HW * itemsize),
    )

    return pl.pallas_call(
        _fused_kernel,
        out_shape=jax.ShapeDtypeStruct((B, C, HW), x_flat.dtype),
        grid_spec=pltpu.PrefetchScalarGridSpec(
            num_scalar_prefetch=0,
            grid=(B // Bt,),
            in_specs=[
                pl.BlockSpec((Bt, C, HW), lambda i: (i, 0, 0)),
                pl.BlockSpec((C, Cr), lambda i: (0, 0)),
                pl.BlockSpec((1, Cr), lambda i: (0, 0)),
                pl.BlockSpec((Cr, C), lambda i: (0, 0)),
                pl.BlockSpec((1, C), lambda i: (0, 0)),
            ],
            out_specs=pl.BlockSpec((Bt, C, HW), lambda i: (i, 0, 0)),
        ),
        compiler_params=pltpu.CompilerParams(
            dimension_semantics=("parallel",),
            vmem_limit_bytes=vmem_limit,
        ),
        cost_estimate=cost,
    )(x_flat, w1_mat, b1_2d, w2_mat, b2_2d)


# --------------------------- tiled fallback ----------------------------------


def _pool_kernel(x_ref, o_ref, *, hw, thw):
    t = pl.program_id(1)

    @pl.when(t == 0)
    def _():
        o_ref[...] = jnp.zeros_like(o_ref)

    xblk = x_ref[...].astype(jnp.float32)                 # (Bt, C, thw)
    if hw % thw != 0:
        # Mask the partial trailing spatial tile (padded reads are undefined).
        lane = jax.lax.broadcasted_iota(jnp.int32, xblk.shape, 2)
        xblk = jnp.where(t * thw + lane < hw, xblk, 0.0)
    o_ref[...] += jnp.sum(xblk, axis=-1, keepdims=True)   # (Bt, C, 1)


def _scale_kernel(x_ref, s_ref, o_ref):
    o_ref[...] = (x_ref[...] * s_ref[...]).astype(o_ref.dtype)


def _calayer_tiled(x_flat, w1_mat, b1_vec, w2_mat, b2_vec, *, block_budget,
                   vmem_cap, max_spatial_tile=None):
    B, C, HW = x_flat.shape
    itemsize = x_flat.dtype.itemsize

    # Lane-dense spatial tile (multiple of 128), sized to the VMEM budget.
    thw = max(128, (block_budget // (C * itemsize)) // 128 * 128)
    if max_spatial_tile is not None:
        thw = max(128, min(thw, max_spatial_tile) // 128 * 128)
    thw = min(thw, _round_up(HW, 128))
    n_t = int(pl.cdiv(HW, thw))

    max_bt = max(1, block_budget // (C * thw * itemsize))
    Bt = _pick_batch_tile(B, max_bt)
    block_bytes = Bt * C * thw * itemsize
    vmem_limit = int(min(max(4 * block_bytes + (4 << 20), 32 << 20),
                         (vmem_cap * 3) // 4))

    # Pass 1: pooled lane-sum over HW tiles (reduction axis last, "arbitrary").
    sums = pl.pallas_call(
        functools.partial(_pool_kernel, hw=HW, thw=thw),
        out_shape=jax.ShapeDtypeStruct((B, C, 1), jnp.float32),
        grid_spec=pltpu.PrefetchScalarGridSpec(
            num_scalar_prefetch=0,
            grid=(B // Bt, n_t),
            in_specs=[pl.BlockSpec((Bt, C, thw), lambda i, t: (i, 0, t))],
            out_specs=pl.BlockSpec((Bt, C, 1), lambda i, t: (i, 0, 0)),
        ),
        compiler_params=pltpu.CompilerParams(
            dimension_semantics=("parallel", "arbitrary"),
            vmem_limit_bytes=vmem_limit,
        ),
        cost_estimate=pl.CostEstimate(
            flops=int(B * C * HW), transcendentals=0,
            bytes_accessed=int(B * C * HW * itemsize)),
    )(x_flat)

    # Tiny squeeze/excite on the pooled vector in plain JAX (negligible work;
    # 1/(H*W) is folded into w1_mat so the raw sums feed it directly).
    h = jnp.maximum(
        jnp.dot(sums[:, :, 0], w1_mat, precision=_HIGHEST) + b1_vec, 0.0)
    s = jax.nn.sigmoid(jnp.dot(h, w2_mat, precision=_HIGHEST) + b2_vec)
    s3 = s[:, :, None].astype(jnp.float32)                 # (B, C, 1)

    # Pass 2: per-channel rescale, tiled over HW (both grid axes parallel).
    return pl.pallas_call(
        _scale_kernel,
        out_shape=jax.ShapeDtypeStruct((B, C, HW), x_flat.dtype),
        grid_spec=pltpu.PrefetchScalarGridSpec(
            num_scalar_prefetch=0,
            grid=(B // Bt, n_t),
            in_specs=[
                pl.BlockSpec((Bt, C, thw), lambda i, t: (i, 0, t)),
                pl.BlockSpec((Bt, C, 1), lambda i, t: (i, 0, 0)),
            ],
            out_specs=pl.BlockSpec((Bt, C, thw), lambda i, t: (i, 0, t)),
        ),
        compiler_params=pltpu.CompilerParams(
            dimension_semantics=("parallel", "parallel"),
            vmem_limit_bytes=vmem_limit,
        ),
        cost_estimate=pl.CostEstimate(
            flops=int(B * C * HW), transcendentals=0,
            bytes_accessed=int(2 * B * C * HW * itemsize)),
    )(x_flat, s3)


# ------------------------------- wrapper --------------------------------------


def calayer(x, w1_conv, b1, w2_conv, b2, *, force_tiled=False,
            max_spatial_tile=None):
    """Channel attention: x * sigmoid(conv2(relu(conv1(avgpool(x))))).

    x:        (B, C, H, W)
    w1_conv:  (C//8, C) or (C//8, C, 1, 1)   -- PyTorch Conv2d weight layout
    b1:       (C//8,)
    w2_conv:  (C, C//8) or (C, C//8, 1, 1)
    b2:       (C,)
    """
    B, C, H, W = x.shape
    Cr = b1.shape[0]
    HW = H * W

    # PyTorch (Cout, Cin, 1, 1) conv weights -> matmul layout (no in-kernel
    # transposes); fold the 1/(H*W) mean factor into w1.
    w1_mat = (w1_conv.reshape(Cr, C).T / HW).astype(jnp.float32)    # (C, Cr)
    w2_mat = w2_conv.reshape(C, Cr).T.astype(jnp.float32)           # (Cr, C)
    b1_f = b1.astype(jnp.float32)
    b2_f = b2.astype(jnp.float32)

    x_flat = x.reshape(B, C, HW)   # contiguous reshape: free bitcast, no copy

    # Generation-aware budgets (~1/8 of physical VMEM per block keeps
    # double-buffered in+out blocks + weights well inside 64 MiB on v7x and
    # 128 MiB on v5e/v6e).
    vmem_cap = _vmem_capacity_bytes()
    block_budget = max(1 << 20, vmem_cap // 8)

    bytes_per_image = C * HW * x_flat.dtype.itemsize
    if force_tiled or bytes_per_image > block_budget:
        out_flat = _calayer_tiled(x_flat, w1_mat, b1_f, w2_mat, b2_f,
                                  block_budget=block_budget, vmem_cap=vmem_cap,
                                  max_spatial_tile=max_spatial_tile)
    else:
        out_flat = _calayer_fused(x_flat, w1_mat, b1_f.reshape(1, Cr),
                                  w2_mat, b2_f.reshape(1, C),
                                  block_budget=block_budget, vmem_cap=vmem_cap)
    return out_flat.reshape(B, C, H, W)


def calayer_ref(x, w1_conv, b1, w2_conv, b2):
    # Pure-JAX reference (PyTorch Conv2d 1x1 semantics).
    B, C, H, W = x.shape
    Cr = b1.shape[0]
    y = jnp.mean(x, axis=(2, 3))                                     # (B, C)
    h = jnp.maximum(
        jnp.dot(y, w1_conv.reshape(Cr, C).T, precision=_HIGHEST) + b1, 0.0)
    s = jax.nn.sigmoid(
        jnp.dot(h, w2_conv.reshape(C, Cr).T, precision=_HIGHEST) + b2)
    return x * s[:, :, None, None]


if __name__ == "__main__":
    key = jax.random.PRNGKey(0)
    C = 32
    Cr = C // 8
    kx, k1, k2, k3, k4, kx2 = jax.random.split(key, 6)

    # Synthetic parameters in PyTorch Conv2d (Cout, Cin) 1x1 layout.
    w1 = jax.random.normal(k1, (Cr, C), dtype=jnp.float32) * (1.0 / jnp.sqrt(C))
    b1 = jax.random.normal(k2, (Cr,), dtype=jnp.float32) * 0.1
    w2 = jax.random.normal(k3, (C, Cr), dtype=jnp.float32) * (1.0 / jnp.sqrt(Cr))
    b2 = jax.random.normal(k4, (C,), dtype=jnp.float32) * 0.1

    # Case 1: fused path, HW a multiple of 128.
    x1 = jax.random.normal(kx, (2, C, 16, 16), dtype=jnp.float32)
    out1 = jax.block_until_ready(calayer(x1, w1, b1, w2, b2))
    ref1 = calayer_ref(x1, w1, b1, w2, b2)
    assert out1.shape == x1.shape
    assert jnp.allclose(out1, ref1, atol=2e-5, rtol=2e-5), "fused path mismatch"

    # Case 2: fused path with HW NOT a multiple of 128 (no wrapper-side pad).
    x2 = jax.random.normal(kx2, (2, C, 18, 14), dtype=jnp.float32)
    out2 = jax.block_until_ready(calayer(x2, w1, b1, w2, b2))
    ref2 = calayer_ref(x2, w1, b1, w2, b2)
    assert jnp.allclose(out2, ref2, atol=2e-5, rtol=2e-5), "ragged-HW mismatch"

    # Case 3: force the large-feature-map tiled fallback (pool + scale kernels)
    # on the same small input, exercising a partial trailing spatial tile.
    out3 = jax.block_until_ready(
        calayer(x2, w1, b1, w2, b2, force_tiled=True, max_spatial_tile=128))
    assert jnp.allclose(out3, ref2, atol=2e-5, rtol=2e-5), "tiled path mismatch"

    print("KERNEL_OK")
</pallas_src>

<mosaic_0001>
module attributes {stable_mosaic.version = 11 : i64} {
  func.func @_fused_kernel(%arg0: i32, %arg1: memref<1x32x256xf32, #tpu.memory_space<vmem>>, %arg2: memref<32x4xf32, #tpu.memory_space<vmem>>, %arg3: memref<1x4xf32, #tpu.memory_space<vmem>>, %arg4: memref<4x32xf32, #tpu.memory_space<vmem>>, %arg5: memref<1x32xf32, #tpu.memory_space<vmem>>, %arg6: memref<1x32x256xf32, #tpu.memory_space<vmem>>) attributes {dimension_semantics = [#tpu.dimension_semantics<parallel>], iteration_bounds = array<i64: 2>, scalar_prefetch = 0 : i64, scratch_operands = 0 : i64, tpu.core_type = #tpu.core_type<tc>, window_params = [{transform_indices = @transform_0, window_bounds = array<i64: 1, 32, 256>}, {pipeline_mode = #tpu.pipeline_mode<synchronous>, transform_indices = @transform_1, window_bounds = array<i64: 32, 4>}, {pipeline_mode = #tpu.pipeline_mode<synchronous>, transform_indices = @transform_2, window_bounds = array<i64: 1, 4>}, {pipeline_mode = #tpu.pipeline_mode<synchronous>, transform_indices = @transform_3, window_bounds = array<i64: 4, 32>}, {pipeline_mode = #tpu.pipeline_mode<synchronous>, transform_indices = @transform_4, window_bounds = array<i64: 1, 32>}, {transform_indices = @transform_5, window_bounds = array<i64: 1, 32, 256>}]} {
    %c0 = arith.constant 0 : index
    %c0_0 = arith.constant 0 : index
    %c0_1 = arith.constant 0 : index
    %0 = vector.load %arg1[%c0, %c0_0, %c0_1] : memref<1x32x256xf32, #tpu.memory_space<vmem>>, vector<1x32x256xf32>
    %cst = arith.constant dense<0.000000e+00> : vector<1x32xf32>
    %1 = vector.multi_reduction <add>, %0, %cst [2] : vector<1x32x256xf32> to vector<1x32xf32>
    %c0_2 = arith.constant 0 : index
    %c0_3 = arith.constant 0 : index
    %2 = vector.load %arg2[%c0_2, %c0_3] : memref<32x4xf32, #tpu.memory_space<vmem>>, vector<32x4xf32>
    %cst_4 = arith.constant dense<0.000000e+00> : vector<1x4xf32>
    %3 = tpu.matmul %1, %2, %cst_4 {dimension_numbers = #tpu.dot_dimension_numbers<[1], [0], [0], [1], [0, 0, 1, 1], [], []>, precision = #tpu.contract_precision<fp32>} : vector<1x32xf32>, vector<32x4xf32>, vector<1x4xf32> -> vector<1x4xf32>
    %c0_5 = arith.constant 0 : index
    %c0_6 = arith.constant 0 : index
    %4 = vector.load %arg3[%c0_5, %c0_6] : memref<1x4xf32, #tpu.memory_space<vmem>>, vector<1x4xf32>
    %5 = arith.addf %3, %4 : vector<1x4xf32>
    %cst_7 = arith.constant 0.000000e+00 : f32
    %6 = vector.broadcast %cst_7 : f32 to vector<1x4xf32>
    %7 = arith.maximumf %5, %6 : vector<1x4xf32>
    %c0_8 = arith.constant 0 : index
    %c0_9 = arith.constant 0 : index
    %8 = vector.load %arg4[%c0_8, %c0_9] : memref<4x32xf32, #tpu.memory_space<vmem>>, vector<4x32xf32>
    %cst_10 = arith.constant dense<0.000000e+00> : vector<1x32xf32>
    %9 = tpu.matmul %7, %8, %cst_10 {dimension_numbers = #tpu.dot_dimension_numbers<[1], [0], [0], [1], [0, 0, 1, 1], [], []>, precision = #tpu.contract_precision<fp32>} : vector<1x4xf32>, vector<4x32xf32>, vector<1x32xf32> -> vector<1x32xf32>
    %c0_11 = arith.constant 0 : index
    %c0_12 = arith.constant 0 : index
    %10 = vector.load %arg5[%c0_11, %c0_12] : memref<1x32xf32, #tpu.memory_space<vmem>>, vector<1x32xf32>
    %11 = arith.addf %9, %10 : vector<1x32xf32>
    %12 = arith.negf %11 : vector<1x32xf32>
    %13 = math.exp %12 : vector<1x32xf32>
    %cst_13 = arith.constant 1.000000e+00 : f32
    %14 = vector.broadcast %cst_13 : f32 to vector<1x32xf32>
    %15 = arith.addf %14, %13 : vector<1x32xf32>
    %16 = arith.divf %14, %15 : vector<1x32xf32>
    %c0_14 = arith.constant 0 : index
    %c0_15 = arith.constant 0 : index
    %c0_16 = arith.constant 0 : index
    %17 = vector.load %arg1[%c0_14, %c0_15, %c0_16] : memref<1x32x256xf32, #tpu.memory_space<vmem>>, vector<1x32x256xf32>
    %18 = vector.shape_cast %16 : vector<1x32xf32> to vector<1x32x1xf32>
    %19 = vector.broadcast %18 : vector<1x32x1xf32> to vector<1x32x256xf32>
    %20 = arith.mulf %17, %19 : vector<1x32x256xf32>
    %c0_17 = arith.constant 0 : index
    %c0_18 = arith.constant 0 : index
    %c0_19 = arith.constant 0 : index
    %21 = vector.load %arg6[%c0_17, %c0_18, %c0_19] : memref<1x32x256xf32, #tpu.memory_space<vmem>>, vector<1x32x256xf32>
    tpu.vector_store %arg6[%c0_17, %c0_18, %c0_19], %20 {strides = array<i32>} : memref<1x32x256xf32, #tpu.memory_space<vmem>>, vector<1x32x256xf32>,
    return
  }
  func.func @transform_0(%arg0: i32) -> (i32, i32, i32) {
    %c0_i32 = arith.constant 0 : i32
    %c0_i32_0 = arith.constant 0 : i32
    %c0_i32_1 = arith.constant 0 : i32
    return %arg0, %c0_i32, %c0_i32_0 : i32, i32, i32
  }
  func.func @transform_1(%arg0: i32) -> (i32, i32) {
    %c0_i32 = arith.constant 0 : i32
    %c0_i32_0 = arith.constant 0 : i32
    %c0_i32_1 = arith.constant 0 : i32
    return %c0_i32, %c0_i32_0 : i32, i32
  }
  func.func @transform_2(%arg0: i32) -> (i32, i32) {
    %c0_i32 = arith.constant 0 : i32
    %c0_i32_0 = arith.constant 0 : i32
    %c0_i32_1 = arith.constant 0 : i32
    return %c0_i32, %c0_i32_0 : i32, i32
  }
  func.func @transform_3(%arg0: i32) -> (i32, i32) {
    %c0_i32 = arith.constant 0 : i32
    %c0_i32_0 = arith.constant 0 : i32
    %c0_i32_1 = arith.constant 0 : i32
    return %c0_i32, %c0_i32_0 : i32, i32
  }
  func.func @transform_4(%arg0: i32) -> (i32, i32) {
    %c0_i32 = arith.constant 0 : i32
    %c0_i32_0 = arith.constant 0 : i32
    %c0_i32_1 = arith.constant 0 : i32
    return %c0_i32, %c0_i32_0 : i32, i32
  }
  func.func @transform_5(%arg0: i32) -> (i32, i32, i32) {
    %c0_i32 = arith.constant 0 : i32
    %c0_i32_0 = arith.constant 0 : i32
    %c0_i32_1 = arith.constant 0 : i32
    return %arg0, %c0_i32, %c0_i32_0 : i32, i32, i32
  }
}

</mosaic_0001>

<bundles_post_ra>
// kernel: tpu_custom_call.1
= control target key start
LH: loop header
LB: loop body
LE: loop exit
PB: predicated region body
PF: predicated region fallthrough
CT: control target
= control target key end

     0   :  { %10 = vsyncpa [#allocation3], 0  ;;  %s1177_s0 = inlined_call_operand.hbm [shape: f32[2,32,256], index: 0, kind: input, shape index: {}]   ;;  %s1178_s1 = inlined_call_operand.vmem [shape: f32[32,4], index: 1, kind: input, shape index: {}]   ;;  %s1179_s2 = inlined_call_operand.vmem [shape: f32[1,4], index: 2, kind: input, shape index: {}]   ;;  %s1180_s3 = inlined_call_operand.vmem [shape: f32[4,32], index: 3, kind: input, shape index: {}]   ;;  %s1181_s4 = inlined_call_operand.vmem [shape: f32[1,32], index: 4, kind: input, shape index: {}]   ;;  %s1182_s5 = inlined_call_operand.hbm [shape: f32[2,32,256], index: 5, kind: output, shape index: {}]  }
   0x1   :  { %12 = vsyncpa [#allocation3 + $0x1], 0 }
   0x2   :  { %13 = vsyncpa [#allocation4], 0 }
   0x3   :  { %15 = vsyncpa [#allocation4 + $0x1], 0  ;;  %s991_s18 = smov 0   ;;  %s993_s19 = smov 0  }
   0x4   :  { %s995_s20 = smov 0   ;;  %s997_s21 = smov 0  }
   0x5 LB: > { %s1012_s22 = sadd.s32 4294967295, %s955_s21   ;;  %s783_s23 = sadd.s32 4294967294, %s955_s21   ;;  %s955_s21 = sphi %s997_s21, %s1192_s21   ;;  %s951_s20 = sphi %s995_s20, %s1191_s20   ;;  %s947_s19 = sphi %s993_s19, %s1190_s19   ;;  %s943_s18 = sphi %s991_s18, %s1189_s18  }
   0x6   : > { %s1016_s24 = sadd.s32 1, %s955_s21   ;;  %s28_s25 = sadd.s32 1, %s951_s20 }
   0x7   : > { %s25_s26 = ssub.s32 %s955_s21, %s1016_s24  ;;  %p35_p0 = scmp.ne.s32.totalorder %s951_s20, %s947_s19 }
   0x8   : > { %p26_p1 = scmp.eq.s32.totalorder %s25_s26, 0  ;;  %p36_p2 = scmp.eq.s32.totalorder %s955_s21, 0 }
   0x9   : > { %p41_p3 = scmp.ne.s32.totalorder %s947_s19, %s943_s18  ;;  %p42_p4 = scmp.eq.s32.totalorder %s1012_s22, 0 }
   0xa   : > { %s1028_s27 = scalar_select %p26_p1, %s951_s20, %s28_s25  }
   0xb   : > { %p1030_p5 = por %p36_p2, %p35_p0  ;;  %p1034_p6 = por %p42_p4, %p41_p3 }
   0xc   : > { %p149_p7 = scmp.eq.s32.totalorder %s1012_s22, 1  ;;  %p155_p8 = scmp.eq.s32.totalorder %s783_s23, 1 }
   0xd   : > { %p812_p10 = scmp.lt.s32.totalorder %s955_s21, 2  ;;  %s187_s7 = sand.u32 1, %s951_s20  }
   0xe   : > { %p1041_p11 = por %p149_p7, %p35_p0  ;;  %p1045_p12 = por %p155_p8, %p41_p3 }
   0xf   : > { %s798_s8 = sshll.u32 %s955_s21, 6  ;;  %s786_s9 = sshll.u32 %s187_s7, 6 }
  0x10   : > { %s196_s12 = scalar_lea.hbm %s1177_s0, %s798_s8  ;;  %s191_s14 = scalar_lea.vmem [#allocation2], %s786_s9 }
  0x11   : > { %s197_s13 = sshll.u32 %s196_s12, 4  ;;  %s199_s15 = sshll.u32 %s191_s14, 4  ;;  %s198_s13 = int_to_ptr.hbm [resolvable:$true] %s197_s13  ;;  %s200_s15 = int_to_ptr.vmem [resolvable:$true] %s199_s15 }
  0x12   : > { %p1056_p13 = pnand %p812_p10, %p1030_p5  ;;  %p789_p0 = scmp.ge.s32.totalorder %s955_s21, 1 }
  0x13   : > { %p207_p1 = scmp.lt.s32.totalorder %s955_s21, 3  ;;  %s188_s17 = scalar_lea.sflag [#allocation3], %s187_s7 }
  0x14   : > { %s859_s23 = sshra.s32 %s198_s13, 4  ;;  %p863_p3 = pneg %p1056_p13  ;;  %s860_s23 = int_to_ptr.hbm [resolvable:$true] %s859_s23 }
  0x15   : > { %s861_s25 = scalar_lea.hbm %s860_s23, 64  ;;  %s866_s28 = scalar_lea.hbm %s1177_s0, 128 }
  0x16   : > { %p862_p2 = scmp.ne.s32.totalorder %s860_s23, %s861_s25  ;;  %p867_p5 = scmp.lt.s32.totalorder %s860_s23, %s1177_s0 }
  0x17   : > { %p868_p8 = scmp.lt.s32.totalorder %s866_s28, %s861_s25 }
  0x18   : > { %p864_p4 = pnand %p863_p3, %p862_p2 }
  0x19   : > { %p869_p10 = por %p868_p8, %p867_p5 }
  0x1a   : > { %p865_p7 = pneg %p864_p4 }
  0x1c   : > { %p870_p9 = pnand %p869_p10, %p865_p7 }
  0x1e   : > { %873 = shalt.err (!%p870_p9)
}
  0x1f   : > { %s957_s7 = smov 256   ;;  %s958_s11 = smov 16  }
  0x20   : > { %807 = dma.hbm_to_vmem [thread:$0]  (!%p1056_p13), %s198_s13, 1024, %s200_s15, %s188_s17, %s957_s7, %s957_s7, %s958_s11  }
  0x21   : > { %p208_p2 = pnand %p789_p0, %p207_p1 }
  0x22   : > { %s1077_s12 = sand.u32 (!%p208_p2), 1, %s947_s19  }
  0x23   : > { %211 = sbr.rel (%p208_p2) target bundleno = 633 (0x279), region = 40  ;;  %s790_s14 = sshll.u32 (!%p208_p2), %s1077_s12, 6 }
  0x24   : > { %s214_s23 = scalar_lea.sflag (!%p208_p2), [#allocation3], %s1077_s12  ;;  %s217_s25 = scalar_lea.vmem (!%p208_p2), [#allocation2], %s790_s14 }
  0x28   : > { %934 = dma.done.wait (%p1034_p6), %s214_s23, 1024  }
  0x29   : > { %936 = vsyncadd (%p1034_p6), %s214_s23, 4294966272  ;;  %v1087_v0 = vld [vmem:[%s217_s25] sm:$0xff]  ;;  %v1089_v1 = vld [vmem:[%s217_s25 + $0x8] sm:$0xff]  ;;  %v274_v36 = vlaneseq  ;;  %vm279_vm0 = vcmask 130112   ;;  %vm283_vm1 = vcmask 195712   ;;  %vm287_vm2 = vcmask 261312  }
  0x2a   : > { %v1091_v2 = vld [vmem:[%s217_s25 + $0x20] sm:$0xff]  ;;  %v253_v3 = vadd.f32 %v1089_v1, %v1087_v0  ;;  %v1095_v4 = vld [vmem:[%s217_s25 + $0x28] sm:$0xff]  ;;  %v1099_v6 = vld [vmem:[%s217_s25 + $0x10] sm:$0xff]  ;;  %vm289_vm3 = vcmask 261120   ;;  %vm484_vm4 = vcmask 1043456   ;;  %vm480_vm5 = vcmask 31744  }
  0x2b   : > { %v259_v5 = vadd.f32 %v1095_v4, %v1091_v2  ;;  %v1101_v7 = vld [vmem:[%s217_s25 + $0x18] sm:$0xff]  ;;  %v1103_v8 = vld [vmem:[%s217_s25 + $0x30] sm:$0xff]  ;;  %v266_v17 = vld [vmem:[%s1178_s1 + $0x8] sm:$0xff]  ;;  %v275_v39 = vand.u32 127, %v274_v36  ;;  %s244_s29 = scalar_lea.vmem [#allocation5], %s790_s14  ;;  %s799_s13 = sshll.u32 %s1012_s22, 6 }
  0x2c   : > { %254 = vadd.xlane.f32.xlu0 %v253_v3  ;;  %v1105_v9 = vld [vmem:[%s217_s25 + $0x38] sm:$0xff]  ;;  %v256_v10 = vadd.f32 %v1101_v7, %v1099_v6  ;;  %v267_v14 = vld [vmem:[%s1178_s1 + $0x10] sm:$0xff]  ;;  %v308_v20 = vand.u32 4294901760, %v266_v17  ;;  %v265_v21 = vld [vmem:[%s1178_s1] sm:$0xff]  ;;  %s706_s17 = scalar_lea.hbm %s1182_s5, %s799_s13  ;;  %s707_s26 = sshll.u32 %s244_s29, 4  ;;  %s708_s26 = int_to_ptr.vmem [resolvable:$true] %s707_s26 }
  0x2d   : > { %260 = vadd.xlane.f32.xlu1 %v259_v5  ;;  %v262_v11 = vadd.f32 %v1105_v9, %v1103_v8  ;;  %v268_v12 = vld [vmem:[%s1178_s1 + $0x18] sm:$0xff]  ;;  %v306_v16 = vand.u32 4294901760, %v267_v14  ;;  %v310_v25 = vand.u32 4294901760, %v265_v21  ;;  %v277_v40 = vadd.s32 4294967288, %v275_v39  ;;  %v478_v58 = vld [vmem:[%s1180_s3] sm:$0xf] }
  0x2e   : > { %v304_v13 = vand.u32 4294901760, %v268_v12  ;;  %v346_v24 = vsub.f32 %v266_v17, %v308_v20  ;;  %v281_v41 = vadd.s32 4294967280, %v275_v39  ;;  %v285_v42 = vadd.s32 4294967272, %v275_v39  ;;  %v269_v5 = vld [vmem:[%s1179_s2] sm:$0x1]  ;;  %s709_s8 = sshll.u32 %s706_s17, 4  ;;  %s710_s8 = int_to_ptr.hbm [resolvable:$true] %s709_s8 }
  0x2f   : > { %v340_v19 = vsub.f32 %v267_v14, %v306_v16  ;;  %v352_v29 = vsub.f32 %v265_v21, %v310_v25  ;;  %v486_v59 = vsel %vm484_vm4, %v478_v58, 0  ;;  %s695_s22 = scalar_lea.sflag [#allocation4], %s1077_s12  ;;  %s903_s14 = sshra.s32 %s710_s8, 4  ;;  %s904_s14 = int_to_ptr.hbm [resolvable:$true] %s903_s14 }
  0x30   : > { %v334_v15 = vsub.f32 %v268_v12, %v304_v13  ;;  %405 = vmatpush.msra.mxu3 %v304_v13  ;;  %305 = vmatpush.msra.mxu0 %v304_v13  ;;  %v347_v28 = vand.u32 4294901760, %v346_v24  ;;  %v503_v60 = vand.u32 4294901760, %v486_v59  ;;  %s905_s28 = scalar_lea.hbm %s904_s14, 64  ;;  %s909_s7 = scalar_lea.hbm %s1182_s5, 128 }
  0x31   : > { %v341_v23 = vand.u32 4294901760, %v340_v19  ;;  %v353_v32 = vand.u32 4294901760, %v352_v29  ;;  %p906_p6 = scmp.ne.s32.totalorder %s904_s14, %s905_s28  ;;  %p910_p0 = scmp.lt.s32.totalorder %s904_s14, %s1182_s5 }
  0x32   : > { %v335_v18 = vand.u32 4294901760, %v334_v15  ;;  %376 = vmatpush.msra.mxu2 %v334_v15  ;;  %407 = vmatpush.msra.mxu3 %v306_v16  ;;  %v348_v31 = vsub.f32 %v346_v24, %v347_v28  ;;  %v530_v61 = vsub.f32 %v486_v59, %v503_v60  ;;  %p911_p1 = scmp.lt.s32.totalorder %s909_s7, %s905_s28 }
  0x33   : > { %307 = vmatpush.msra.mxu0 %v306_v16  ;;  %v342_v27 = vsub.f32 %v340_v19, %v341_v23  ;;  %v354_v34 = vsub.f32 %v352_v29, %v353_v32  ;;  %p907_p9 = pnand %p906_p6, %p1041_p11 }
  0x34   : > { %257 = vadd.xlane.f32.xlu0 %v256_v10  ;;  %v336_v22 = vsub.f32 %v334_v15, %v335_v18  ;;  %379 = vmatpush.msra.mxu2 %v340_v19  ;;  %v349_v33 = vand.u32 4294901760, %v348_v31  ;;  %v531_v62 = vand.u32 4294901760, %v530_v61  ;;  %p912_p3 = por %p911_p1, %p910_p0 }
  0x35   : > { %263 = vadd.xlane.f32.xlu1 %v262_v11  ;;  %409 = vmatpush.msra.mxu3 %v308_v20  ;;  %v343_v30 = vand.u32 4294901760, %v342_v27  ;;  %v355_v35 = vand.u32 4294901760, %v354_v34  ;;  %p908_p13 = pneg %p907_p9 }
  0x36   : > { %309 = vmatpush.msra.mxu0 %v308_v20  ;;  %v337_v26 = vand.u32 4294901760, %v336_v22  ;;  %382 = vmatpush.msra.mxu2 %v346_v24  ;;  %v532_v63 = vsub.f32 %v530_v61, %v531_v62 }
  0x37   : > { %411 = vmatpush.msra.mxu3 %v310_v25  ;;  %p913_p4 = pnand %p912_p3, %p908_p13 }
  0x38   : > { %311 = vmatpush.msra.mxu0 %v310_v25  ;;  %338 = vmatpush.msra.mxu1 %v337_v26  ;;  %v533_v3 = vand.u32 4294901760, %v532_v63 }
  0x39   : > { %385 = vmatpush.msra.mxu2 %v352_v29  ;;  %v479_v29 = vld [vmem:[%s1181_s4] sm:$0x1] }
  0x3a   : > { %434 = vmatpush.msrb.mxu0 %v335_v18  ;;  %344 = vmatpush.msra.mxu1 %v343_v30 }
  0x3b   : > { %504 = vmatpush.msrb.mxu2 %v503_v60  ;;  %534 = vmatpush.msrb.mxu3 %v533_v3 }
  0x3c   : > { %438 = vmatpush.msrb.mxu0 %v341_v23  ;;  %350 = vmatpush.msra.mxu1 %v349_v33 }
  0x3e   : > { %442 = vmatpush.msrb.mxu0 %v347_v28  ;;  %356 = vmatpush.msra.mxu1 %v355_v35 }
  0x40   : > { %465 = vmatpush.msrb.mxu1 %v304_v13  ;;  %446 = vmatpush.msrb.mxu0 %v353_v32  ;;  %v655_v32 = vshrl.u32 %v274_v36, 7 }
  0x42   : > { %467 = vmatpush.msrb.mxu1 %v306_v16  ;;  %850 = vset.pattern.permute.xlu2 %v655_v32  ;;  %v674_v34 = vadd.s32 24, %v655_v32  ;;  %v668_v35 = vadd.s32 16, %v655_v32  ;;  %v662_v59 = vadd.s32 8, %v655_v32 }
  0x44   : > { %469 = vmatpush.msrb.mxu1 %v308_v20  ;;  %853 = vset.pattern.permute.xlu1 %v674_v34 }
  0x45   : > { %852 = vset.pattern.permute.xlu0 %v668_v35 }
  0x46   : > { %471 = vmatpush.msrb.mxu1 %v310_v25 }
  0x9f   : > { %v255_v37 = vpop.xlane.xlu0 %254 }
  0xa0   : > { %v261_v38 = vpop.xlane.xlu1 %260  ;;  %v276_v44 = vperm.slane %v255_v37, %v275_v39 }
  0xa1   : > { %v282_v47 = vperm.slane %v261_v38, %v281_v41 }
  0xa7   : > { %v258_v43 = vpop.xlane.xlu0 %257 }
  0xa8   : > { %v278_v45 = vperm.slane %v258_v43, %v277_v40  ;;  %v264_v46 = vpop.xlane.xlu1 %263 }
  0xa9   : > { %v286_v48 = vperm.slane %v264_v46, %v285_v42 }
  0xaa   : > { %v280_v49 = vsel %vm279_vm0, %v278_v45, %v276_v44 }
  0xab   : > { %v284_v50 = vsel %vm283_vm1, %v282_v47, %v280_v49 }
  0xac   : > { %v288_v51 = vsel %vm287_vm2, %v286_v48, %v284_v50 }
  0xad   : > { %v290_v52 = vsel %vm289_vm3, %v288_v51, 0 }
  0xae   : > { %v312_v53 = vand.u32 4294901760, %v290_v52 }
  0xb0   : > { %358 = vmatmul.f32.vlgmr.msra.gmra.mxu1 %v312_v53  ;;  %v313_v54 = vsub.f32 %v290_v52, %v312_v53 }
  0xb1   : > { %580 = vmatpush.msra.mxu1 %v503_v60 }
  0xb2   : > { %388 = vmatmul.f32.vlgmr.msra.gmra.mxu2 %v313_v54  ;;  %v314_v55 = vand.u32 4294901760, %v313_v54 }
  0xb3   : > { %606 = vmatpush.msra.mxu2 %v531_v62 }
  0xb4   : > { %415 = vmatmul.f32.vlgmr.msra.gmra.mxu3 %v314_v55  ;;  %v315_v56 = vsub.f32 %v313_v54, %v314_v55 }
  0xb5   : > { %628 = vmatpush.msra.mxu3 %v503_v60 }
  0xb6   : > { %v316_v57 = vand.u32 4294901760, %v315_v56 }
  0xb8   : > { %317 = vmatmul.f32.vlgmr.msra.gmra.mxu0 %v316_v57  ;;  %473 = vmatmul.f32.vlgmr.msrb.gmra.mxu1 %v312_v53 }
  0xb9   : > { %557 = vmatpush.msra.mxu0 %v530_v61 }
  0xc0   : > { %448 = vmatmul.f32.vlgmr.msrb.gmra.mxu0 %v312_v53 }
 0x12d   : > { %v359_v10 = vpop.f32.mrf.mxu1 }
 0x135   : > { %v318_v11 = vpop.f32.mrf.mxu0  ;;  %v389_v14 = vpop.f32.mrf.mxu2 }
 0x136   : > { %v319_v12 = vadd.f32 %v318_v11, %v269_v5  ;;  %v474_v20 = vpop.f32.mrf.mxu1 }
 0x137   : > { %v416_v16 = vpop.f32.mrf.mxu3 }
 0x138   : > { %v360_v13 = vadd.f32 %v359_v10, %v319_v12 }
 0x13a   : > { %v390_v15 = vadd.f32 %v389_v14, %v360_v13 }
 0x13c   : > { %v417_v17 = vadd.f32 %v416_v16, %v390_v15 }
 0x13d   : > { %v449_v18 = vpop.f32.mrf.mxu0 }
 0x13e   : > { %v450_v19 = vadd.f32 %v449_v18, %v417_v17 }
 0x140   : > { %v475_v21 = vadd.f32 %v474_v20, %v450_v19 }
 0x142   : > { %v477_v22 = vmax.f32 %v475_v21, 0.0 }
 0x144   : > { %v482_v23 = vsel %vm480_vm5, %v477_v22, 0 }
 0x145   : > { %v505_v24 = vand.u32 4294901760, %v482_v23 }
 0x147   : > { %v506_v25 = vsub.f32 %v482_v23, %v505_v24  ;;  %536 = vmatmul.f32.vlgmr.msrb.gmra.mxu3 %v505_v24 }
 0x149   : > { %560 = vmatmul.f32.vlgmr.msra.gmra.mxu0 %v506_v25  ;;  %v507_v26 = vand.u32 4294901760, %v506_v25 }
 0x14b   : > { %584 = vmatmul.f32.vlgmr.msra.gmra.mxu1 %v507_v26  ;;  %v508_v27 = vsub.f32 %v506_v25, %v507_v26 }
 0x14d   : > { %v509_v28 = vand.u32 4294901760, %v508_v27 }
 0x14f   : > { %510 = vmatmul.f32.vlgmr.msrb.gmra.mxu2 %v509_v28  ;;  %630 = vmatmul.f32.vlgmr.msra.gmra.mxu3 %v505_v24 }
 0x157   : > { %608 = vmatmul.f32.vlgmr.msra.gmra.mxu2 %v505_v24 }
 0x1c6   : > { %v561_v38 = vpop.f32.mrf.mxu0 }
 0x1c8   : > { %v585_v40 = vpop.f32.mrf.mxu1 }
 0x1ca   : > { %v537_v30 = vpop.f32.mrf.mxu3 }
 0x1d2   : > { %v511_v31 = vpop.f32.mrf.mxu2  ;;  %v631_v44 = vpop.f32.mrf.mxu3 }
 0x1d3   : > { %v512_v33 = vadd.f32 %v511_v31, %v479_v29 }
 0x1d5   : > { %v538_v37 = vadd.f32 %v537_v30, %v512_v33 }
 0x1d7   : > { %v562_v39 = vadd.f32 %v561_v38, %v538_v37 }
 0x1d9   : > { %v586_v41 = vadd.f32 %v585_v40, %v562_v39 }
 0x1da   : > { %v609_v42 = vpop.f32.mrf.mxu2 }
 0x1db   : > { %v610_v43 = vadd.f32 %v609_v42, %v586_v41 }
 0x1dd   : > { %v632_v45 = vadd.f32 %v631_v44, %v610_v43 }
 0x1df   : > { %v792_v46 = vmul.f32 -1.442695, %v632_v45 }
 0x1e1   : > { %855 = vpow2.f32 %v792_v46 }
 0x1e7   : > { %v856_v47 = vpop.eup %855 }
 0x1e8   : > { %v637_v48 = vadd.f32 1.0, %v856_v47 }
 0x1ea   : > { %857 = vrcp.f32 %v637_v48  ;;  %v649_v51 = vand.u32 2147483648, %v637_v48  ;;  %v647_v53 = vand.u32 2147483647, %v637_v48  ;;  %vm643_vm7 = vweird.f32 %v637_v48 }
 0x1ec   : > { %v650_v55 = vor.u32 1.1754944e-38, %v649_v51  ;;  %vm648_vm9 = vcmp.eq.f32.partialorder %v647_v53, 8.507059e+37 }
 0x1f0   : > { %v858_v36 = vpop.eup %857 }
 0x1f1   : > { %v639_v49 = vmul.f32 %v858_v36, %v637_v48  ;;  %vm644_vm6 = vweird.f32 %v858_v36 }
 0x1f2   : > { %vm645_vm8 = vmor %vm643_vm7, %vm644_vm6 }
 0x1f3   : > { %v640_v50 = vsub.f32 1.0, %v639_v49 }
 0x1f5   : > { %v641_v52 = vmul.f32 %v858_v36, %v640_v50 }
 0x1f7   : > { %v642_v54 = vadd.f32 %v858_v36, %v641_v52 }
 0x1f9   : > { %v646_v56 = vsel %vm645_vm8, %v858_v36, %v642_v54 }
 0x1fa   : > { %v651_v57 = vsel %vm648_vm9, %v650_v55, %v646_v56 }
 0x1fb   : > { %v653_v58 = vperm.slane %v651_v57, 0 }
 0x1fd   : > { %676 = vperm.xlu1 %853, %v653_v58   ;;  %670 = vperm.xlu0 %852, %v653_v58  }
 0x1fe   : > { %658 = vperm.xlu2 %850, %v653_v58  }
 0x205   : > { %854 = vset.pattern.permute.xlu0 %v674_v34 }
 0x206   : > { %851 = vset.pattern.permute.xlu2 %v662_v59 }
 0x20e   : > { %664 = vperm.xlu2 %851, %v653_v58  }
 0x258   : > { %v659_v60 = vpop.permute.xlu2 %658 }
 0x259   : > { %v678_v61 = vmul.f32 %v659_v60, %v1087_v0  ;;  %v679_v62 = vmul.f32 %v659_v60, %v1089_v1 }
 0x25b   : > { %686 = vst [vmem:[%s244_s29] sm:$0xff] %v678_v61 }
 0x25c   : > { %687 = vst [vmem:[%s244_s29 + $0x8] sm:$0xff] %v679_v62 }
 0x268   : > { %v665_v63 = vpop.permute.xlu2 %664 }
 0x269   : > { %v680_v3 = vmul.f32 %v665_v63, %v1099_v6  ;;  %v681_v5 = vmul.f32 %v665_v63, %v1101_v7 }
 0x26b   : > { %688 = vst [vmem:[%s244_s29 + $0x10] sm:$0xff] %v680_v3 }
 0x26c   : > { %689 = vst [vmem:[%s244_s29 + $0x18] sm:$0xff] %v681_v5 }
 0x26f   : > { %v677_v0 = vpop.permute.xlu1 %676  ;;  %v671_v1 = vpop.permute.xlu0 %670 }
 0x270   : > { %v684_v10 = vmul.f32 %v677_v0, %v1103_v8  ;;  %v685_v11 = vmul.f32 %v677_v0, %v1105_v9  ;;  %v682_v6 = vmul.f32 %v671_v1, %v1091_v2  ;;  %v683_v7 = vmul.f32 %v671_v1, %v1095_v4 }
 0x272   : > { %692 = vst [vmem:[%s244_s29 + $0x30] sm:$0xff] %v684_v10 }
 0x273   : > { %693 = vst [vmem:[%s244_s29 + $0x38] sm:$0xff] %v685_v11 }
 0x274   : > { %690 = vst [vmem:[%s244_s29 + $0x20] sm:$0xff] %v682_v6 }
 0x275   : > { %691 = vst [vmem:[%s244_s29 + $0x28] sm:$0xff] %v683_v7 }
 0x276   : > { %916 = shalt.err (!%p913_p4)
}
 0x277   : > { %s959_s12 = smov 256   ;;  %s960_s25 = smov 16  }
 0x278   : > { %802 = dma.vmem_to_hbm [thread:$0]  (%p1041_p11), %s708_s26, 1024, %s710_s8, %s695_s22, %s959_s12, %s959_s12, %s960_s25  }
 0x279 PF: > { %s724_s29 = sand.u32 1, %s943_s18   ;;  %p1188_p7 = scmp.ge.s32.totalorder %s955_s21, 2 }
 0x27a   : > { %s725_s13 = scalar_lea.sflag [#allocation4], %s724_s29 }
 0x27b   : > { %p809_p5 = pnand %p1188_p7, %p1045_p12 }
 0x27d   : > { %p810_p8 = pneg %p809_p5 }
 0x27f   : > { %938 = dma.done.wait (%p810_p8), %s725_s13, 1024  }
 0x280   : > { %940 = vsyncadd (%p810_p8), %s725_s13, 4294966272  ;;  %p18_p10 = scmp.ge.s32.totalorder %s1016_s24, 4   ;;  %s1189_s18 = smov %s947_s19 }
 0x281   : > { %s1190_s19 = smov %s951_s20  ;;  %s1191_s20 = smov %s1028_s27 }
 0x282   : > { %s1192_s21 = smov %s1016_s24  ;;  %20 = sbr.rel (!%p18_p10) target bundleno = 5 (0x5), region = 85 }
 0x287   :  { %731 = vsyncpa [#allocation3], 1 }
 0x288   :  { %733 = vsyncpa [#allocation3 + $0x1], 1 }
 0x289   :  { %734 = vsyncpa [#allocation4], 1 }
 0x28a   :  { %736 = vsyncpa [#allocation4 + $0x1], 1 }

</bundles_post_ra>
